<compile_context>
chip_gen: v6e
topology: v6e:2x2x1
jax: 0.10.0
libtpu: 0.0.40
codegen_flags: <defaults>
</compile_context>

<pallas_src>
import jax
import jax.numpy as jnp
import numpy as np
from jax import lax
from jax.experimental import pallas as pl
from jax.experimental.pallas import tpu as pltpu

CATEGORIES = ("car", "pedestrian", "traffic")


# --------------------------------------------------------------------------
# Fused kernel: single grid step; unrolled loop over the 3 categories.
# Per category: 2 x (diag-norm -> linear -> A-aggregate -> diag-norm -> bias
#                    -> ReLU)  +  masked max-pool over valid nodes.
# --------------------------------------------------------------------------
def _fused_multiview_kernel(nums_ref,            # SMEM (C,) int32 (scalar prefetch)
                            a_ref,               # (C, Np, Np)  bf16 adjacency
                            x_ref,               # (C, Np, Fin) f32 node features
                            w1_ref, b1_ref,      # (C, Fin, Hp) bf16 / (C, 1, Hp) f32
                            w2_ref, b2_ref,      # (C, Hp, Hp)  bf16 / (C, 1, Hp) f32
                            out_ref):            # (C, Np + 8, Hp) f32
    n_cat, n_pad, _ = a_ref.shape
    h_pad = out_ref.shape[-1]
    pool_rows = out_ref.shape[1] - n_pad          # 8 reserved sublane-aligned rows

    for ci in range(n_cat):                       # static -> fully unrolled (C == 3)
        a = a_ref[ci]                             # (Np, Np) bf16, entries in {0, 1}
        x = x_ref[ci]                             # (Np, Fin) f32

        # in_degrees ** -0.5, computed once per category (layer-invariant);
        # guarded so zero-degree (padded / isolated) nodes give 0, not inf.
        deg = jnp.sum(a.astype(jnp.float32), axis=-1, keepdims=True)   # (Np, 1)
        norm = jnp.where(deg > 0.0, lax.rsqrt(deg), 0.0)

        # Valid-node mask: padded rows would otherwise leak relu(bias).
        n_valid = nums_ref[ci]
        row_ids = lax.broadcasted_iota(jnp.int32, (n_pad, 1), 0)
        valid = (row_ids < n_valid).astype(jnp.float32)

        # ---- GCN layer 1 + ReLU (W applied before the A aggregation) -------
        #   ((A @ (x*norm)) * norm) @ W1 + b1 == (A @ ((x*norm) @ W1)) * norm + b1
        t = jnp.dot((x * norm).astype(jnp.bfloat16), w1_ref[ci],
                    preferred_element_type=jnp.float32)                # (Np, Hp)
        h = jnp.dot(a, t.astype(jnp.bfloat16),
                    preferred_element_type=jnp.float32)
        h = jnp.maximum(h * norm + b1_ref[ci], 0.0)

        # ---- GCN layer 2 + ReLU (same graph -> reuse deg/norm) -------------
        t = jnp.dot((h * norm).astype(jnp.bfloat16), w2_ref[ci],
                    preferred_element_type=jnp.float32)
        h = jnp.dot(a, t.astype(jnp.bfloat16),
                    preferred_element_type=jnp.float32)
        h = jnp.maximum(h * norm + b2_ref[ci], 0.0)
        h = h * valid                              # zero out padded rows

        # Node features + fused max-pool.  ReLU output >= 0, so zeroed padded
        # rows never exceed the true per-feature max.  The pool lives in the
        # reserved rows -> a single lane-dense output stream.
        out_ref[ci, 0:n_pad, :] = h
        pool = jnp.max(h, axis=0, keepdims=True)                       # (1, Hp)
        out_ref[ci, n_pad:n_pad + pool_rows, :] = jnp.broadcast_to(
            pool, (pool_rows, h_pad))


def _fused_multiview_call(nums, adj_s, feat_s, w1_s, b1_s, w2_s, b2_s, n_rows):
    n_cat, n_pad, _ = adj_s.shape
    f_in = feat_s.shape[-1]
    h_pad = w1_s.shape[-1]

    def full(shape):
        return pl.BlockSpec(shape, lambda i, nums: (0,) * len(shape))

    grid_spec = pltpu.PrefetchScalarGridSpec(
        num_scalar_prefetch=1,
        grid=(1,),                      # single step: category loop is in-kernel
        in_specs=[
            full((n_cat, n_pad, n_pad)),     # A  (bf16)
            full((n_cat, n_pad, f_in)),      # x  (f32)
            full((n_cat, f_in, h_pad)),      # W1 (bf16)
            full((n_cat, 1, h_pad)),         # b1 (f32)
            full((n_cat, h_pad, h_pad)),     # W2 (bf16)
            full((n_cat, 1, h_pad)),         # b2 (f32)
        ],
        out_specs=full((n_cat, n_rows, h_pad)),
    )
    return pl.pallas_call(
        _fused_multiview_kernel,
        out_shape=jax.ShapeDtypeStruct((n_cat, n_rows, h_pad), jnp.float32),
        grid_spec=grid_spec,
        compiler_params=pltpu.CompilerParams(dimension_semantics=("arbitrary",)),
    )(nums, adj_s, feat_s, w1_s, b1_s, w2_s, b2_s)


# --------------------------------------------------------------------------
# Module-level wrappers (MultiViewGCN.forward + pool_features semantics).
# --------------------------------------------------------------------------
def init_params(key, in_feats, hidden_size):
    """Deterministic synthetic weights: two GCN layers per category."""
    params = {}
    for ci, category in enumerate(CATEGORIES):
        k = jax.random.fold_in(key, ci)
        k0w, k0b, k1w, k1b = jax.random.split(k, 4)
        params[category] = [
            {   # GCNLayer(in_feats, hidden): stored as W^T (Fin, Fout), b (1, Fout)
                "w_t": 0.1 * jax.random.normal(k0w, (in_feats, hidden_size), jnp.float32),
                "b": 0.1 * jax.random.normal(k0b, (1, hidden_size), jnp.float32),
            },
            {   # GCNLayer(hidden, hidden)
                "w_t": 0.1 * jax.random.normal(k1w, (hidden_size, hidden_size), jnp.float32),
                "b": 0.1 * jax.random.normal(k1b, (1, hidden_size), jnp.float32),
            },
        ]
    return params


def multi_view_gcn_forward(adjs, features, params):
    """MultiViewGCN.forward (per-category 2-layer GCN + ReLU) with the
    max-pool fused in.  Returns (outputs_dict, pooled)."""
    n_list = [int(features[c].shape[0]) for c in CATEGORIES]
    n_max = max(n_list)
    hidden = params[CATEGORIES[0]][0]["w_t"].shape[1]

    if n_max == 0:   # all views empty: pass-through, zero pooled features
        outputs = {c: features[c] for c in CATEGORIES}
        pooled = jnp.concatenate(
            [jnp.zeros((features[c].shape[1],), jnp.float32) for c in CATEGORIES])
        return outputs, pooled

    f_in = features[CATEGORIES[0]].shape[1]
    n_pad = max(8, ((n_max + 7) // 8) * 8)            # sublane-aligned node count
    h_pad = max(128, ((hidden + 127) // 128) * 128)   # lane-dense hidden dim
    n_rows = n_pad + 8                                # +8 reserved rows for the pool

    def pad2(a, rows, cols):
        return jnp.pad(a, ((0, rows - a.shape[0]), (0, cols - a.shape[1])))

    # A is exactly {0,1} -> bf16 is lossless and halves bytes on the N^2 term.
    adj_s = jnp.stack([pad2(adjs[i].astype(jnp.float32), n_pad, n_pad)
                       for i in range(len(CATEGORIES))]).astype(jnp.bfloat16)
    feat_s = jnp.stack([pad2(features[c].astype(jnp.float32), n_pad, f_in)
                        for c in CATEGORIES])
    # Zero-padded weight/bias columns -> padded output features are exactly 0.
    w1_s = jnp.stack([pad2(params[c][0]["w_t"], f_in, h_pad)
                      for c in CATEGORIES]).astype(jnp.bfloat16)
    b1_s = jnp.stack([pad2(params[c][0]["b"], 1, h_pad) for c in CATEGORIES])
    w2_s = jnp.stack([pad2(params[c][1]["w_t"], h_pad, h_pad)
                      for c in CATEGORIES]).astype(jnp.bfloat16)
    b2_s = jnp.stack([pad2(params[c][1]["b"], 1, h_pad) for c in CATEGORIES])
    nums = jnp.asarray(n_list, jnp.int32)

    out = _fused_multiview_call(nums, adj_s, feat_s, w1_s, b1_s, w2_s, b2_s, n_rows)

    outputs, pooled_parts = {}, []
    for ci, category in enumerate(CATEGORIES):
        n = n_list[ci]
        if n > 0:
            outputs[category] = out[ci, :n, :hidden]
            pooled_parts.append(out[ci, n_pad, :hidden])   # fused max-pool row
        else:
            outputs[category] = features[category]          # reference pass-through
            pooled_parts.append(
                jnp.zeros((features[category].shape[1],), jnp.float32))
    return outputs, jnp.concatenate(pooled_parts)


def pool_features(features):
    """Reference MultiViewGCN.pool_features (plain JAX, for checking)."""
    pooled = []
    for category in features:
        f = features[category]
        if f.shape[0] > 0:
            pooled.append(jnp.max(f, axis=0))
        else:
            pooled.append(jnp.zeros((f.shape[1],), f.dtype))
    return jnp.concatenate(pooled)


def _reference_forward(adjs, features, params):
    """Pure-JAX f32 reference for correctness checking."""
    outputs = {}
    for i, category in enumerate(CATEGORIES):
        h = features[category]
        if h.shape[0] > 0:
            a = adjs[i]
            deg = jnp.sum(a, axis=-1, keepdims=True)
            norm = jnp.where(deg > 0.0, lax.rsqrt(deg), 0.0)
            for layer in params[category]:
                hm = h * norm
                agg = jnp.dot(a, hm, precision=lax.Precision.HIGHEST)
                hm = agg * norm
                h = jnp.maximum(
                    jnp.dot(hm, layer["w_t"], precision=lax.Precision.HIGHEST)
                    + layer["b"], 0.0)
        outputs[category] = h
    return outputs


def make_graph(key, n):
    """Random dense adjacency with self-loops (keeps in-degrees > 0)."""
    a = (jax.random.uniform(key, (n, n)) < 0.4).astype(jnp.float32)
    return jnp.clip(a + jnp.eye(n, dtype=jnp.float32), 0.0, 1.0)


if __name__ == "__main__":
    key = jax.random.PRNGKey(0)
    in_feats, hidden_size = 4, 32
    num_nodes = {"car": 8, "pedestrian": 6, "traffic": 4}

    kp, kg, kf = jax.random.split(key, 3)
    params = init_params(kp, in_feats, hidden_size)

    adjs, features = [], {}
    for ci, category in enumerate(CATEGORIES):
        n = num_nodes[category]
        adjs.append(make_graph(jax.random.fold_in(kg, ci), n))
        features[category] = jax.random.normal(
            jax.random.fold_in(kf, ci), (n, in_feats), jnp.float32)

    outputs, pooled = multi_view_gcn_forward(adjs, features, params)
    for category in CATEGORIES:
        jax.block_until_ready(outputs[category])
        assert outputs[category].shape == (num_nodes[category], hidden_size)
    jax.block_until_ready(pooled)
    assert pooled.shape == (len(CATEGORIES) * hidden_size,)

    # Correctness check against the pure-JAX f32 reference (kernel uses bf16
    # MXU inputs with f32 accumulation -> slightly looser tolerances).
    ref_out = _reference_forward(adjs, features, params)
    for category in CATEGORIES:
        np.testing.assert_allclose(
            np.asarray(outputs[category]), np.asarray(ref_out[category]),
            rtol=2e-2, atol=5e-3)
    np.testing.assert_allclose(
        np.asarray(pooled), np.asarray(pool_features(ref_out)),
        rtol=2e-2, atol=5e-3)

    print("KERNEL_OK")
</pallas_src>

<mosaic_0001>
module attributes {stable_mosaic.version = 11 : i64} {
  func.func @_fused_multiview_kernel(%arg0: i32, %arg1: memref<3xi32, #tpu.memory_space<smem>>, %arg2: memref<3x8x8xbf16, #tpu.memory_space<vmem>>, %arg3: memref<3x8x4xf32, #tpu.memory_space<vmem>>, %arg4: memref<3x4x128xbf16, #tpu.memory_space<vmem>>, %arg5: memref<3x1x128xf32, #tpu.memory_space<vmem>>, %arg6: memref<3x128x128xbf16, #tpu.memory_space<vmem>>, %arg7: memref<3x1x128xf32, #tpu.memory_space<vmem>>, %arg8: memref<3x16x128xf32, #tpu.memory_space<vmem>>) attributes {dimension_semantics = [#tpu.dimension_semantics<arbitrary>], iteration_bounds = array<i64: 1>, scalar_prefetch = 1 : i64, scratch_operands = 0 : i64, tpu.core_type = #tpu.core_type<tc>, window_params = [{pipeline_mode = #tpu.pipeline_mode<synchronous>, transform_indices = @transform_0, window_bounds = array<i64: 3, 8, 8>}, {pipeline_mode = #tpu.pipeline_mode<synchronous>, transform_indices = @transform_1, window_bounds = array<i64: 3, 8, 4>}, {pipeline_mode = #tpu.pipeline_mode<synchronous>, transform_indices = @transform_2, window_bounds = array<i64: 3, 4, 128>}, {pipeline_mode = #tpu.pipeline_mode<synchronous>, transform_indices = @transform_3, window_bounds = array<i64: 3, 1, 128>}, {pipeline_mode = #tpu.pipeline_mode<synchronous>, transform_indices = @transform_4, window_bounds = array<i64: 3, 128, 128>}, {pipeline_mode = #tpu.pipeline_mode<synchronous>, transform_indices = @transform_5, window_bounds = array<i64: 3, 1, 128>}, {pipeline_mode = #tpu.pipeline_mode<synchronous>, transform_indices = @transform_6, window_bounds = array<i64: 3, 16, 128>}]} {
    %c0 = arith.constant 0 : index
    %c0_0 = arith.constant 0 : index
    %c0_1 = arith.constant 0 : index
    %0 = vector.load %arg2[%c0, %c0_0, %c0_1] : memref<3x8x8xbf16, #tpu.memory_space<vmem>>, vector<1x8x8xbf16>
    %1 = vector.shape_cast %0 : vector<1x8x8xbf16> to vector<8x8xbf16>
    %c0_2 = arith.constant 0 : index
    %c0_3 = arith.constant 0 : index
    %c0_4 = arith.constant 0 : index
    %2 = vector.load %arg3[%c0_2, %c0_3, %c0_4] : memref<3x8x4xf32, #tpu.memory_space<vmem>>, vector<1x8x4xf32>
    %3 = vector.shape_cast %2 : vector<1x8x4xf32> to vector<8x4xf32>
    %4 = arith.extf %1 : vector<8x8xbf16> to vector<8x8xf32>
    %cst = arith.constant dense<0.000000e+00> : vector<8xf32>
    %5 = vector.multi_reduction <add>, %4, %cst [1] : vector<8x8xf32> to vector<8xf32>
    %6 = vector.shape_cast %5 : vector<8xf32> to vector<8x1xf32>
    %cst_5 = arith.constant 0.000000e+00 : f32
    %7 = vector.broadcast %cst_5 : f32 to vector<8x1xf32>
    %8 = arith.cmpf ogt, %6, %7 : vector<8x1xf32>
    %9 = math.rsqrt %6 : vector<8x1xf32>
    %cst_6 = arith.constant 0.000000e+00 : f32
    %10 = vector.broadcast %cst_6 : f32 to vector<8x1xf32>
    %11 = arith.select %8, %9, %10 : vector<8x1xi1>, vector<8x1xf32>
    %c0_7 = arith.constant 0 : index
    %12 = memref.load %arg1[%c0_7] : memref<3xi32, #tpu.memory_space<smem>>
    %13 = tpu.iota {dimensions = array<i32: 0>} : vector<8x1xi32>
    %14 = vector.broadcast %12 : i32 to vector<8x1xi32>
    %15 = arith.cmpi slt, %13, %14 : vector<8x1xi32>
    %16 = arith.extui %15 : vector<8x1xi1> to vector<8x1xi32>
    %17 = arith.sitofp %16 : vector<8x1xi32> to vector<8x1xf32>
    %18 = vector.broadcast %11 : vector<8x1xf32> to vector<8x4xf32>
    %19 = arith.mulf %3, %18 : vector<8x4xf32>
    %20 = arith.truncf %19 : vector<8x4xf32> to vector<8x4xbf16>
    %c0_8 = arith.constant 0 : index
    %c0_9 = arith.constant 0 : index
    %c0_10 = arith.constant 0 : index
    %21 = vector.load %arg4[%c0_8, %c0_9, %c0_10] : memref<3x4x128xbf16, #tpu.memory_space<vmem>>, vector<1x4x128xbf16>
    %22 = vector.shape_cast %21 : vector<1x4x128xbf16> to vector<4x128xbf16>
    %cst_11 = arith.constant dense<0.000000e+00> : vector<8x128xf32>
    %23 = tpu.matmul %20, %22, %cst_11 {dimension_numbers = #tpu.dot_dimension_numbers<[1], [0], [0], [1], [0, 0, 1, 1], [], []>} : vector<8x4xbf16>, vector<4x128xbf16>, vector<8x128xf32> -> vector<8x128xf32>
    %24 = arith.truncf %23 : vector<8x128xf32> to vector<8x128xbf16>
    %cst_12 = arith.constant dense<0.000000e+00> : vector<8x128xf32>
    %25 = tpu.matmul %1, %24, %cst_12 {dimension_numbers = #tpu.dot_dimension_numbers<[1], [0], [0], [1], [0, 0, 1, 1], [], []>} : vector<8x8xbf16>, vector<8x128xbf16>, vector<8x128xf32> -> vector<8x128xf32>
    %26 = vector.broadcast %11 : vector<8x1xf32> to vector<8x128xf32>
    %27 = arith.mulf %25, %26 : vector<8x128xf32>
    %c0_13 = arith.constant 0 : index
    %c0_14 = arith.constant 0 : index
    %c0_15 = arith.constant 0 : index
    %28 = vector.load %arg5[%c0_13, %c0_14, %c0_15] : memref<3x1x128xf32, #tpu.memory_space<vmem>>, vector<1x1x128xf32>
    %29 = vector.shape_cast %28 : vector<1x1x128xf32> to vector<1x128xf32>
    %30 = vector.broadcast %29 : vector<1x128xf32> to vector<8x128xf32>
    %31 = arith.addf %27, %30 : vector<8x128xf32>
    %cst_16 = arith.constant 0.000000e+00 : f32
    %32 = vector.broadcast %cst_16 : f32 to vector<8x128xf32>
    %33 = arith.maximumf %31, %32 : vector<8x128xf32>
    %34 = vector.broadcast %11 : vector<8x1xf32> to vector<8x128xf32>
    %35 = arith.mulf %33, %34 : vector<8x128xf32>
    %36 = arith.truncf %35 : vector<8x128xf32> to vector<8x128xbf16>
    %c0_17 = arith.constant 0 : index
    %c0_18 = arith.constant 0 : index
    %c0_19 = arith.constant 0 : index
    %37 = vector.load %arg6[%c0_17, %c0_18, %c0_19] : memref<3x128x128xbf16, #tpu.memory_space<vmem>>, vector<1x128x128xbf16>
    %38 = vector.shape_cast %37 : vector<1x128x128xbf16> to vector<128x128xbf16>
    %cst_20 = arith.constant dense<0.000000e+00> : vector<8x128xf32>
    %39 = tpu.matmul %36, %38, %cst_20 {dimension_numbers = #tpu.dot_dimension_numbers<[1], [0], [0], [1], [0, 0, 1, 1], [], []>} : vector<8x128xbf16>, vector<128x128xbf16>, vector<8x128xf32> -> vector<8x128xf32>
    %40 = arith.truncf %39 : vector<8x128xf32> to vector<8x128xbf16>
    %cst_21 = arith.constant dense<0.000000e+00> : vector<8x128xf32>
    %41 = tpu.matmul %1, %40, %cst_21 {dimension_numbers = #tpu.dot_dimension_numbers<[1], [0], [0], [1], [0, 0, 1, 1], [], []>} : vector<8x8xbf16>, vector<8x128xbf16>, vector<8x128xf32> -> vector<8x128xf32>
    %42 = vector.broadcast %11 : vector<8x1xf32> to vector<8x128xf32>
    %43 = arith.mulf %41, %42 : vector<8x128xf32>
    %c0_22 = arith.constant 0 : index
    %c0_23 = arith.constant 0 : index
    %c0_24 = arith.constant 0 : index
    %44 = vector.load %arg7[%c0_22, %c0_23, %c0_24] : memref<3x1x128xf32, #tpu.memory_space<vmem>>, vector<1x1x128xf32>
    %45 = vector.shape_cast %44 : vector<1x1x128xf32> to vector<1x128xf32>
    %46 = vector.broadcast %45 : vector<1x128xf32> to vector<8x128xf32>
    %47 = arith.addf %43, %46 : vector<8x128xf32>
    %cst_25 = arith.constant 0.000000e+00 : f32
    %48 = vector.broadcast %cst_25 : f32 to vector<8x128xf32>
    %49 = arith.maximumf %47, %48 : vector<8x128xf32>
    %50 = vector.broadcast %17 : vector<8x1xf32> to vector<8x128xf32>
    %51 = arith.mulf %49, %50 : vector<8x128xf32>
    %c0_26 = arith.constant 0 : index
    %c0_27 = arith.constant 0 : index
    %c0_28 = arith.constant 0 : index
    %52 = vector.load %arg8[%c0_26, %c0_27, %c0_28] : memref<3x16x128xf32, #tpu.memory_space<vmem>>, vector<1x8x128xf32>
    %53 = vector.shape_cast %52 : vector<1x8x128xf32> to vector<8x128xf32>
    %54 = vector.shape_cast %51 : vector<8x128xf32> to vector<1x8x128xf32>
    tpu.vector_store %arg8[%c0_26, %c0_27, %c0_28], %54 {strides = array<i32>} : memref<3x16x128xf32, #tpu.memory_space<vmem>>, vector<1x8x128xf32>,
    %cst_29 = arith.constant dense<0xFF800000> : vector<128xf32>
    %55 = vector.multi_reduction <maximumf>, %51, %cst_29 [0] : vector<8x128xf32> to vector<128xf32>
    %56 = vector.shape_cast %55 : vector<128xf32> to vector<1x128xf32>
    %57 = vector.shape_cast %56 : vector<1x128xf32> to vector<1x128xf32>
    %58 = vector.broadcast %57 : vector<1x128xf32> to vector<8x128xf32>
    %c0_30 = arith.constant 0 : index
    %c8 = arith.constant 8 : index
    %c0_31 = arith.constant 0 : index
    %59 = vector.load %arg8[%c0_30, %c8, %c0_31] : memref<3x16x128xf32, #tpu.memory_space<vmem>>, vector<1x8x128xf32>
    %60 = vector.shape_cast %59 : vector<1x8x128xf32> to vector<8x128xf32>
    %61 = vector.shape_cast %58 : vector<8x128xf32> to vector<1x8x128xf32>
    tpu.vector_store %arg8[%c0_30, %c8, %c0_31], %61 {strides = array<i32>} : memref<3x16x128xf32, #tpu.memory_space<vmem>>, vector<1x8x128xf32>,
    %c1 = arith.constant 1 : index
    %c0_32 = arith.constant 0 : index
    %c0_33 = arith.constant 0 : index
    %62 = vector.load %arg2[%c1, %c0_32, %c0_33] : memref<3x8x8xbf16, #tpu.memory_space<vmem>>, vector<1x8x8xbf16>
    %63 = vector.shape_cast %62 : vector<1x8x8xbf16> to vector<8x8xbf16>
    %c1_34 = arith.constant 1 : index
    %c0_35 = arith.constant 0 : index
    %c0_36 = arith.constant 0 : index
    %64 = vector.load %arg3[%c1_34, %c0_35, %c0_36] : memref<3x8x4xf32, #tpu.memory_space<vmem>>, vector<1x8x4xf32>
    %65 = vector.shape_cast %64 : vector<1x8x4xf32> to vector<8x4xf32>
    %66 = arith.extf %63 : vector<8x8xbf16> to vector<8x8xf32>
    %cst_37 = arith.constant dense<0.000000e+00> : vector<8xf32>
    %67 = vector.multi_reduction <add>, %66, %cst_37 [1] : vector<8x8xf32> to vector<8xf32>
    %68 = vector.shape_cast %67 : vector<8xf32> to vector<8x1xf32>
    %cst_38 = arith.constant 0.000000e+00 : f32
    %69 = vector.broadcast %cst_38 : f32 to vector<8x1xf32>
    %70 = arith.cmpf ogt, %68, %69 : vector<8x1xf32>
    %71 = math.rsqrt %68 : vector<8x1xf32>
    %cst_39 = arith.constant 0.000000e+00 : f32
    %72 = vector.broadcast %cst_39 : f32 to vector<8x1xf32>
    %73 = arith.select %70, %71, %72 : vector<8x1xi1>, vector<8x1xf32>
    %c1_40 = arith.constant 1 : index
    %74 = memref.load %arg1[%c1_40] : memref<3xi32, #tpu.memory_space<smem>>
    %75 = tpu.iota {dimensions = array<i32: 0>} : vector<8x1xi32>
    %76 = vector.broadcast %74 : i32 to vector<8x1xi32>
    %77 = arith.cmpi slt, %75, %76 : vector<8x1xi32>
    %78 = arith.extui %77 : vector<8x1xi1> to vector<8x1xi32>
    %79 = arith.sitofp %78 : vector<8x1xi32> to vector<8x1xf32>
    %80 = vector.broadcast %73 : vector<8x1xf32> to vector<8x4xf32>
    %81 = arith.mulf %65, %80 : vector<8x4xf32>
    %82 = arith.truncf %81 : vector<8x4xf32> to vector<8x4xbf16>
    %c1_41 = arith.constant 1 : index
    %c0_42 = arith.constant 0 : index
    %c0_43 = arith.constant 0 : index
    %83 = vector.load %arg4[%c1_41, %c0_42, %c0_43] : memref<3x4x128xbf16, #tpu.memory_space<vmem>>, vector<1x4x128xbf16>
    %84 = vector.shape_cast %83 : vector<1x4x128xbf16> to vector<4x128xbf16>
    %cst_44 = arith.constant dense<0.000000e+00> : vector<8x128xf32>
    %85 = tpu.matmul %82, %84, %cst_44 {dimension_numbers = #tpu.dot_dimension_numbers<[1], [0], [0], [1], [0, 0, 1, 1], [], []>} : vector<8x4xbf16>, vector<4x128xbf16>, vector<8x128xf32> -> vector<8x128xf32>
    %86 = arith.truncf %85 : vector<8x128xf32> to vector<8x128xbf16>
    %cst_45 = arith.constant dense<0.000000e+00> : vector<8x128xf32>
    %87 = tpu.matmul %63, %86, %cst_45 {dimension_numbers = #tpu.dot_dimension_numbers<[1], [0], [0], [1], [0, 0, 1, 1], [], []>} : vector<8x8xbf16>, vector<8x128xbf16>, vector<8x128xf32> -> vector<8x128xf32>
    %88 = vector.broadcast %73 : vector<8x1xf32> to vector<8x128xf32>
    %89 = arith.mulf %87, %88 : vector<8x128xf32>
    %c1_46 = arith.constant 1 : index
    %c0_47 = arith.constant 0 : index
    %c0_48 = arith.constant 0 : index
    %90 = vector.load %arg5[%c1_46, %c0_47, %c0_48] : memref<3x1x128xf32, #tpu.memory_space<vmem>>, vector<1x1x128xf32>
    %91 = vector.shape_cast %90 : vector<1x1x128xf32> to vector<1x128xf32>
    %92 = vector.broadcast %91 : vector<1x128xf32> to vector<8x128xf32>
    %93 = arith.addf %89, %92 : vector<8x128xf32>
    %cst_49 = arith.constant 0.000000e+00 : f32
    %94 = vector.broadcast %cst_49 : f32 to vector<8x128xf32>
    %95 = arith.maximumf %93, %94 : vector<8x128xf32>
    %96 = vector.broadcast %73 : vector<8x1xf32> to vector<8x128xf32>
    %97 = arith.mulf %95, %96 : vector<8x128xf32>
    %98 = arith.truncf %97 : vector<8x128xf32> to vector<8x128xbf16>
    %c1_50 = arith.constant 1 : index
    %c0_51 = arith.constant 0 : index
    %c0_52 = arith.constant 0 : index
    %99 = vector.load %arg6[%c1_50, %c0_51, %c0_52] : memref<3x128x128xbf16, #tpu.memory_space<vmem>>, vector<1x128x128xbf16>
    %100 = vector.shape_cast %99 : vector<1x128x128xbf16> to vector<128x128xbf16>
    %cst_53 = arith.constant dense<0.000000e+00> : vector<8x128xf32>
    %101 = tpu.matmul %98, %100, %cst_53 {dimension_numbers = #tpu.dot_dimension_numbers<[1], [0], [0], [1], [0, 0, 1, 1], [], []>} : vector<8x128xbf16>, vector<128x128xbf16>, vector<8x128xf32> -> vector<8x128xf32>
    %102 = arith.truncf %101 : vector<8x128xf32> to vector<8x128xbf16>
    %cst_54 = arith.constant dense<0.000000e+00> : vector<8x128xf32>
    %103 = tpu.matmul %63, %102, %cst_54 {dimension_numbers = #tpu.dot_dimension_numbers<[1], [0], [0], [1], [0, 0, 1, 1], [], []>} : vector<8x8xbf16>, vector<8x128xbf16>, vector<8x128xf32> -> vector<8x128xf32>
    %104 = vector.broadcast %73 : vector<8x1xf32> to vector<8x128xf32>
    %105 = arith.mulf %103, %104 : vector<8x128xf32>
    %c1_55 = arith.constant 1 : index
    %c0_56 = arith.constant 0 : index
    %c0_57 = arith.constant 0 : index
    %106 = vector.load %arg7[%c1_55, %c0_56, %c0_57] : memref<3x1x128xf32, #tpu.memory_space<vmem>>, vector<1x1x128xf32>
    %107 = vector.shape_cast %106 : vector<1x1x128xf32> to vector<1x128xf32>
    %108 = vector.broadcast %107 : vector<1x128xf32> to vector<8x128xf32>
    %109 = arith.addf %105, %108 : vector<8x128xf32>
    %cst_58 = arith.constant 0.000000e+00 : f32
    %110 = vector.broadcast %cst_58 : f32 to vector<8x128xf32>
    %111 = arith.maximumf %109, %110 : vector<8x128xf32>
    %112 = vector.broadcast %79 : vector<8x1xf32> to vector<8x128xf32>
    %113 = arith.mulf %111, %112 : vector<8x128xf32>
    %c1_59 = arith.constant 1 : index
    %c0_60 = arith.constant 0 : index
    %c0_61 = arith.constant 0 : index
    %114 = vector.load %arg8[%c1_59, %c0_60, %c0_61] : memref<3x16x128xf32, #tpu.memory_space<vmem>>, vector<1x8x128xf32>
    %115 = vector.shape_cast %114 : vector<1x8x128xf32> to vector<8x128xf32>
    %116 = vector.shape_cast %113 : vector<8x128xf32> to vector<1x8x128xf32>
    tpu.vector_store %arg8[%c1_59, %c0_60, %c0_61], %116 {strides = array<i32>} : memref<3x16x128xf32, #tpu.memory_space<vmem>>, vector<1x8x128xf32>,
    %cst_62 = arith.constant dense<0xFF800000> : vector<128xf32>
    %117 = vector.multi_reduction <maximumf>, %113, %cst_62 [0] : vector<8x128xf32> to vector<128xf32>
    %118 = vector.shape_cast %117 : vector<128xf32> to vector<1x128xf32>
    %119 = vector.shape_cast %118 : vector<1x128xf32> to vector<1x128xf32>
    %120 = vector.broadcast %119 : vector<1x128xf32> to vector<8x128xf32>
    %c1_63 = arith.constant 1 : index
    %c8_64 = arith.constant 8 : index
    %c0_65 = arith.constant 0 : index
    %121 = vector.load %arg8[%c1_63, %c8_64, %c0_65] : memref<3x16x128xf32, #tpu.memory_space<vmem>>, vector<1x8x128xf32>
    %122 = vector.shape_cast %121 : vector<1x8x128xf32> to vector<8x128xf32>
    %123 = vector.shape_cast %120 : vector<8x128xf32> to vector<1x8x128xf32>
    tpu.vector_store %arg8[%c1_63, %c8_64, %c0_65], %123 {strides = array<i32>} : memref<3x16x128xf32, #tpu.memory_space<vmem>>, vector<1x8x128xf32>,
    %c2 = arith.constant 2 : index
    %c0_66 = arith.constant 0 : index
    %c0_67 = arith.constant 0 : index
    %124 = vector.load %arg2[%c2, %c0_66, %c0_67] : memref<3x8x8xbf16, #tpu.memory_space<vmem>>, vector<1x8x8xbf16>
    %125 = vector.shape_cast %124 : vector<1x8x8xbf16> to vector<8x8xbf16>
    %c2_68 = arith.constant 2 : index
    %c0_69 = arith.constant 0 : index
    %c0_70 = arith.constant 0 : index
    %126 = vector.load %arg3[%c2_68, %c0_69, %c0_70] : memref<3x8x4xf32, #tpu.memory_space<vmem>>, vector<1x8x4xf32>
    %127 = vector.shape_cast %126 : vector<1x8x4xf32> to vector<8x4xf32>
    %128 = arith.extf %125 : vector<8x8xbf16> to vector<8x8xf32>
    %cst_71 = arith.constant dense<0.000000e+00> : vector<8xf32>
    %129 = vector.multi_reduction <add>, %128, %cst_71 [1] : vector<8x8xf32> to vector<8xf32>
    %130 = vector.shape_cast %129 : vector<8xf32> to vector<8x1xf32>
    %cst_72 = arith.constant 0.000000e+00 : f32
    %131 = vector.broadcast %cst_72 : f32 to vector<8x1xf32>
    %132 = arith.cmpf ogt, %130, %131 : vector<8x1xf32>
    %133 = math.rsqrt %130 : vector<8x1xf32>
    %cst_73 = arith.constant 0.000000e+00 : f32
    %134 = vector.broadcast %cst_73 : f32 to vector<8x1xf32>
    %135 = arith.select %132, %133, %134 : vector<8x1xi1>, vector<8x1xf32>
    %c2_74 = arith.constant 2 : index
    %136 = memref.load %arg1[%c2_74] : memref<3xi32, #tpu.memory_space<smem>>
    %137 = tpu.iota {dimensions = array<i32: 0>} : vector<8x1xi32>
    %138 = vector.broadcast %136 : i32 to vector<8x1xi32>
    %139 = arith.cmpi slt, %137, %138 : vector<8x1xi32>
    %140 = arith.extui %139 : vector<8x1xi1> to vector<8x1xi32>
    %141 = arith.sitofp %140 : vector<8x1xi32> to vector<8x1xf32>
    %142 = vector.broadcast %135 : vector<8x1xf32> to vector<8x4xf32>
    %143 = arith.mulf %127, %142 : vector<8x4xf32>
    %144 = arith.truncf %143 : vector<8x4xf32> to vector<8x4xbf16>
    %c2_75 = arith.constant 2 : index
    %c0_76 = arith.constant 0 : index
    %c0_77 = arith.constant 0 : index
    %145 = vector.load %arg4[%c2_75, %c0_76, %c0_77] : memref<3x4x128xbf16, #tpu.memory_space<vmem>>, vector<1x4x128xbf16>
    %146 = vector.shape_cast %145 : vector<1x4x128xbf16> to vector<4x128xbf16>
    %cst_78 = arith.constant dense<0.000000e+00> : vector<8x128xf32>
    %147 = tpu.matmul %144, %146, %cst_78 {dimension_numbers = #tpu.dot_dimension_numbers<[1], [0], [0], [1], [0, 0, 1, 1], [], []>} : vector<8x4xbf16>, vector<4x128xbf16>, vector<8x128xf32> -> vector<8x128xf32>
    %148 = arith.truncf %147 : vector<8x128xf32> to vector<8x128xbf16>
    %cst_79 = arith.constant dense<0.000000e+00> : vector<8x128xf32>
    %149 = tpu.matmul %125, %148, %cst_79 {dimension_numbers = #tpu.dot_dimension_numbers<[1], [0], [0], [1], [0, 0, 1, 1], [], []>} : vector<8x8xbf16>, vector<8x128xbf16>, vector<8x128xf32> -> vector<8x128xf32>
    %150 = vector.broadcast %135 : vector<8x1xf32> to vector<8x128xf32>
    %151 = arith.mulf %149, %150 : vector<8x128xf32>
    %c2_80 = arith.constant 2 : index
    %c0_81 = arith.constant 0 : index
    %c0_82 = arith.constant 0 : index
    %152 = vector.load %arg5[%c2_80, %c0_81, %c0_82] : memref<3x1x128xf32, #tpu.memory_space<vmem>>, vector<1x1x128xf32>
    %153 = vector.shape_cast %152 : vector<1x1x128xf32> to vector<1x128xf32>
    %154 = vector.broadcast %153 : vector<1x128xf32> to vector<8x128xf32>
    %155 = arith.addf %151, %154 : vector<8x128xf32>
    %cst_83 = arith.constant 0.000000e+00 : f32
    %156 = vector.broadcast %cst_83 : f32 to vector<8x128xf32>
    %157 = arith.maximumf %155, %156 : vector<8x128xf32>
    %158 = vector.broadcast %135 : vector<8x1xf32> to vector<8x128xf32>
    %159 = arith.mulf %157, %158 : vector<8x128xf32>
    %160 = arith.truncf %159 : vector<8x128xf32> to vector<8x128xbf16>
    %c2_84 = arith.constant 2 : index
    %c0_85 = arith.constant 0 : index
    %c0_86 = arith.constant 0 : index
    %161 = vector.load %arg6[%c2_84, %c0_85, %c0_86] : memref<3x128x128xbf16, #tpu.memory_space<vmem>>, vector<1x128x128xbf16>
    %162 = vector.shape_cast %161 : vector<1x128x128xbf16> to vector<128x128xbf16>
    %cst_87 = arith.constant dense<0.000000e+00> : vector<8x128xf32>
    %163 = tpu.matmul %160, %162, %cst_87 {dimension_numbers = #tpu.dot_dimension_numbers<[1], [0], [0], [1], [0, 0, 1, 1], [], []>} : vector<8x128xbf16>, vector<128x128xbf16>, vector<8x128xf32> -> vector<8x128xf32>
    %164 = arith.truncf %163 : vector<8x128xf32> to vector<8x128xbf16>
    %cst_88 = arith.constant dense<0.000000e+00> : vector<8x128xf32>
    %165 = tpu.matmul %125, %164, %cst_88 {dimension_numbers = #tpu.dot_dimension_numbers<[1], [0], [0], [1], [0, 0, 1, 1], [], []>} : vector<8x8xbf16>, vector<8x128xbf16>, vector<8x128xf32> -> vector<8x128xf32>
    %166 = vector.broadcast %135 : vector<8x1xf32> to vector<8x128xf32>
    %167 = arith.mulf %165, %166 : vector<8x128xf32>
    %c2_89 = arith.constant 2 : index
    %c0_90 = arith.constant 0 : index
    %c0_91 = arith.constant 0 : index
    %168 = vector.load %arg7[%c2_89, %c0_90, %c0_91] : memref<3x1x128xf32, #tpu.memory_space<vmem>>, vector<1x1x128xf32>
    %169 = vector.shape_cast %168 : vector<1x1x128xf32> to vector<1x128xf32>
    %170 = vector.broadcast %169 : vector<1x128xf32> to vector<8x128xf32>
    %171 = arith.addf %167, %170 : vector<8x128xf32>
    %cst_92 = arith.constant 0.000000e+00 : f32
    %172 = vector.broadcast %cst_92 : f32 to vector<8x128xf32>
    %173 = arith.maximumf %171, %172 : vector<8x128xf32>
    %174 = vector.broadcast %141 : vector<8x1xf32> to vector<8x128xf32>
    %175 = arith.mulf %173, %174 : vector<8x128xf32>
    %c2_93 = arith.constant 2 : index
    %c0_94 = arith.constant 0 : index
    %c0_95 = arith.constant 0 : index
    %176 = vector.load %arg8[%c2_93, %c0_94, %c0_95] : memref<3x16x128xf32, #tpu.memory_space<vmem>>, vector<1x8x128xf32>
    %177 = vector.shape_cast %176 : vector<1x8x128xf32> to vector<8x128xf32>
    %178 = vector.shape_cast %175 : vector<8x128xf32> to vector<1x8x128xf32>
    tpu.vector_store %arg8[%c2_93, %c0_94, %c0_95], %178 {strides = array<i32>} : memref<3x16x128xf32, #tpu.memory_space<vmem>>, vector<1x8x128xf32>,
    %cst_96 = arith.constant dense<0xFF800000> : vector<128xf32>
    %179 = vector.multi_reduction <maximumf>, %175, %cst_96 [0] : vector<8x128xf32> to vector<128xf32>
    %180 = vector.shape_cast %179 : vector<128xf32> to vector<1x128xf32>
    %181 = vector.shape_cast %180 : vector<1x128xf32> to vector<1x128xf32>
    %182 = vector.broadcast %181 : vector<1x128xf32> to vector<8x128xf32>
    %c2_97 = arith.constant 2 : index
    %c8_98 = arith.constant 8 : index
    %c0_99 = arith.constant 0 : index
    %183 = vector.load %arg8[%c2_97, %c8_98, %c0_99] : memref<3x16x128xf32, #tpu.memory_space<vmem>>, vector<1x8x128xf32>
    %184 = vector.shape_cast %183 : vector<1x8x128xf32> to vector<8x128xf32>
    %185 = vector.shape_cast %182 : vector<8x128xf32> to vector<1x8x128xf32>
    tpu.vector_store %arg8[%c2_97, %c8_98, %c0_99], %185 {strides = array<i32>} : memref<3x16x128xf32, #tpu.memory_space<vmem>>, vector<1x8x128xf32>,
    return
  }
  func.func @transform_0(%arg0: i32, %arg1: memref<3xi32, #tpu.memory_space<smem>>) -> (i32, i32, i32) {
    %c0_i32 = arith.constant 0 : i32
    %c0_i32_0 = arith.constant 0 : i32
    %c0_i32_1 = arith.constant 0 : i32
    %c0_i32_2 = arith.constant 0 : i32
    return %c0_i32, %c0_i32_0, %c0_i32_1 : i32, i32, i32
  }
  func.func @transform_1(%arg0: i32, %arg1: memref<3xi32, #tpu.memory_space<smem>>) -> (i32, i32, i32) {
    %c0_i32 = arith.constant 0 : i32
    %c0_i32_0 = arith.constant 0 : i32
    %c0_i32_1 = arith.constant 0 : i32
    %c0_i32_2 = arith.constant 0 : i32
    return %c0_i32, %c0_i32_0, %c0_i32_1 : i32, i32, i32
  }
  func.func @transform_2(%arg0: i32, %arg1: memref<3xi32, #tpu.memory_space<smem>>) -> (i32, i32, i32) {
    %c0_i32 = arith.constant 0 : i32
    %c0_i32_0 = arith.constant 0 : i32
    %c0_i32_1 = arith.constant 0 : i32
    %c0_i32_2 = arith.constant 0 : i32
    return %c0_i32, %c0_i32_0, %c0_i32_1 : i32, i32, i32
  }
  func.func @transform_3(%arg0: i32, %arg1: memref<3xi32, #tpu.memory_space<smem>>) -> (i32, i32, i32) {
    %c0_i32 = arith.constant 0 : i32
    %c0_i32_0 = arith.constant 0 : i32
    %c0_i32_1 = arith.constant 0 : i32
    %c0_i32_2 = arith.constant 0 : i32
    return %c0_i32, %c0_i32_0, %c0_i32_1 : i32, i32, i32
  }
  func.func @transform_4(%arg0: i32, %arg1: memref<3xi32, #tpu.memory_space<smem>>) -> (i32, i32, i32) {
    %c0_i32 = arith.constant 0 : i32
    %c0_i32_0 = arith.constant 0 : i32
    %c0_i32_1 = arith.constant 0 : i32
    %c0_i32_2 = arith.constant 0 : i32
    return %c0_i32, %c0_i32_0, %c0_i32_1 : i32, i32, i32
  }
  func.func @transform_5(%arg0: i32, %arg1: memref<3xi32, #tpu.memory_space<smem>>) -> (i32, i32, i32) {
    %c0_i32 = arith.constant 0 : i32
    %c0_i32_0 = arith.constant 0 : i32
    %c0_i32_1 = arith.constant 0 : i32
    %c0_i32_2 = arith.constant 0 : i32
    return %c0_i32, %c0_i32_0, %c0_i32_1 : i32, i32, i32
  }
  func.func @transform_6(%arg0: i32, %arg1: memref<3xi32, #tpu.memory_space<smem>>) -> (i32, i32, i32) {
    %c0_i32 = arith.constant 0 : i32
    %c0_i32_0 = arith.constant 0 : i32
    %c0_i32_1 = arith.constant 0 : i32
    %c0_i32_2 = arith.constant 0 : i32
    return %c0_i32, %c0_i32_0, %c0_i32_1 : i32, i32, i32
  }
}

</mosaic_0001>

<bundles_post_ra>
// kernel: tpu_custom_call.1
= control target key start
LH: loop header
LB: loop body
LE: loop exit
PB: predicated region body
PF: predicated region fallthrough
CT: control target
= control target key end

     0   :  { %s1482_s0 = inlined_call_operand.vmem [shape: s32[3], index: 0, kind: input, shape index: {}]   ;;  %s1483_s1 = inlined_call_operand.vmem [shape: bf16[3,8,8], index: 1, kind: input, shape index: {}]   ;;  %s1484_s2 = inlined_call_operand.vmem [shape: f32[3,8,4], index: 2, kind: input, shape index: {}]   ;;  %s1485_s3 = inlined_call_operand.vmem [shape: bf16[3,4,128], index: 3, kind: input, shape index: {}]   ;;  %s1486_s4 = inlined_call_operand.vmem [shape: f32[3,1,128], index: 4, kind: input, shape index: {}]   ;;  %s1487_s5 = inlined_call_operand.hbm [shape: bf16[3,128,128], index: 5, kind: input, shape index: {}]   ;;  %s1488_s6 = inlined_call_operand.vmem [shape: f32[3,1,128], index: 6, kind: input, shape index: {}]   ;;  %s1489_s7 = inlined_call_operand.hbm [shape: f32[3,16,128], index: 7, kind: output, shape index: {}]  }
   0x1   :  { %s12_s26 = sshll.u32 %s1482_s0, 4  ;;  %s13_s26 = int_to_ptr.vmem [resolvable:$true] %s12_s26 }
   0x2   :  { %s1202_s27 = scalar_lea.vmem %s13_s26, 16  ;;  %p1207_p1 = scmp.lt.s32.totalorder %s13_s26, %s13_s26 }
   0x3   :  { %p1203_p0 = scmp.ne.s32.totalorder %s13_s26, %s1202_s27  ;;  %p1208_p2 = scmp.lt.s32.totalorder %s1202_s27, %s1202_s27 }
   0x5   :  { %p1209_p3 = por %p1208_p2, %p1207_p1 }
   0x7   :  { %p1210_p4 = pnand %p1209_p3, %p1203_p0 }
   0x9   :  { %1213 = shalt.err (!%p1210_p4)  }
   0xa   :  { %s1260_s28 = smov [#allocation3]  }
   0xb   :  { %15 = dma.vmem_to_smem %s13_s26, 16, %s1260_s28, [#allocation2] }
   0xc   :  { %1254 = dma.done.wait [#allocation2], 16 }
   0xd   :  { %1255 = vsyncadd [#allocation2], 4294967280 }
   0xe   :  { %17 = sfence }
   0xf   :  { %18 = vsyncpa [#allocation5], 0 }
  0x10   :  { %19 = vsyncpa [#allocation6], 0  ;;  %s1261_s29 = smov [#allocation4]  }
  0x11   :  { %s33_s30 = sshll.u32 %s1261_s29, 4  ;;  %s34_s30 = int_to_ptr.vmem [resolvable:$true] %s33_s30 }
  0x12   :  { %s1222_s8 = scalar_lea.vmem %s34_s30, 3072  ;;  %p1227_p6 = scmp.lt.s32.totalorder %s34_s30, %s34_s30 }
  0x13   :  { %p1223_p5 = scmp.ne.s32.totalorder %s34_s30, %s1222_s8  ;;  %p1228_p7 = scmp.lt.s32.totalorder %s1222_s8, %s1222_s8 }
  0x15   :  { %p1229_p8 = por %p1228_p7, %p1227_p6 }
  0x17   :  { %p1230_p9 = pnand %p1229_p8, %p1223_p5 }
  0x19   :  { %1233 = shalt.err (!%p1230_p9)
}
  0x1a   :  { %s1262_s0 = smov 64   ;;  %s1263_s9 = smov 4  }
  0x1b   :  { %39 = dma.hbm_to_vmem [thread:$0]  %s1487_s5, 3072, %s34_s30, [#allocation5], %s1262_s0, %s1262_s0, %s1263_s9  }
  0x1c   :  { %1256 = dma.done.wait [#allocation5], 3072  }
  0x1d   :  { %1257 = vsyncadd [#allocation5], 4294964224  ;;  %v1318_v0 = vld [vmem:[%s1483_s1] sm:$0xf]  ;;  %vm49_vm0 = vcmask 64512   ;;  %vm70_vm1 = vcmask 1041408  }
  0x1e   :  { %v48_v1 = vunpack.c.l.bf16 %v1318_v0  ;;  %v65_v3 = vld [vmem:[%s1485_s3] sm:$0x3]  ;;  %v1264_v4 = vmov 0.0   ;;  %vm1265_vm2 = vmmov 0   ;;  %vm66_vm4 = vcmask 31744   ;;  %v1172_v13 = vld [vmem:[#allocation4 + $0x38] sm:$0xff]  }
  0x1f   :  { %1049 = vmatprep.subr.bf16.mxu0 %v1264_v4  ;;  %v72_v5 = vsel %vm70_vm1, %v65_v3, 0  ;;  %1055 = vmatprep.subr.bf16.mxu1 %v1264_v4  ;;  %v47_v7 = vld [vmem:[%s1484_s2] sm:$0xff]  ;;  %v1345_v12 = vld [vmem:[%s1483_s1 + $0x8] sm:$0xf]  ;;  %v1173_v15 = vld [vmem:[#allocation4 + $0x30] sm:$0xff]   ;;  %vm118_vm5 = vcmask 1043456  }
  0x20   :  { %v50_v2 = vsel %vm49_vm0, %v48_v1, 0.0  ;;  %1050 = vmatpush3.bf16.msra.mxu0 %v72_v5  ;;  %1051 = vmatprep.mubr.msk.bf16.mxu0 %vm1265_vm2, %v1264_v4  ;;  %v641_v14 = vunpack.c.l.bf16 %v1345_v12  ;;  %v1174_v17 = vld [vmem:[#allocation4 + $0x28] sm:$0xff]   ;;  %v1175_v18 = vld [vmem:[#allocation4 + $0x20] sm:$0xff]   ;;  %v1176_v19 = vld [vmem:[#allocation4 + $0x18] sm:$0xff]   ;;  %s986_s11 = sld [smem:[#allocation3 + $0x2]] }
  0x21   :  { %51 = vadd.xlane.f32.xlu0 %v50_v2  ;;  %1061 = vmatprep.subr.bf16.mxu0 %v1264_v4  ;;  %v1177_v26 = vld [vmem:[#allocation4 + $0x10] sm:$0xff]   ;;  %v1178_v27 = vld [vmem:[#allocation4 + $0x8] sm:$0xff]   ;;  %v1179_v28 = vld [vmem:[#allocation4] sm:$0xff]  }
  0x22   :  { %1057 = vmatprep.mubr.msk.bf16.mxu1 %vm1265_vm2, %v1264_v4  ;;  %v642_v16 = vsel %vm49_vm0, %v641_v14, 0.0  ;;  %v1366_v29 = vld [vmem:[%s1483_s1 + $0x4] sm:$0xf]  ;;  %v953_v34 = vld [vmem:[%s1486_s4] ss:$0 sm:$0xff]  ;;  %v985_v44 = vld [vmem:[%s1484_s2 + $0x10] sm:$0xff] }
  0x23   :  { %643 = vadd.xlane.f32.xlu1 %v642_v16  ;;  %v345_v30 = vunpack.c.l.bf16 %v1366_v29  ;;  %v988_v42 = vld [vmem:[%s1485_s3 + $0x4] sm:$0x3]  ;;  %v968_v54 = vld [vmem:[%s1485_s3 + $0x2] sm:$0x3]  ;;  %v965_v59 = vld [vmem:[%s1484_s2 + $0x8] sm:$0xff]  ;;  %s56_s2 = sld [smem:[#allocation3]] }
  0x24   :  { %v661_v47 = vsel %vm70_vm1, %v988_v42, 0  ;;  %v365_v58 = vsel %vm70_vm1, %v968_v54, 0  ;;  %v1180_v5 = vld [vmem:[#allocation4 + $0xb8] sm:$0xff]   ;;  %v1185_v14 = vld [vmem:[#allocation4 + $0x90] sm:$0xff]   ;;  %v1187_v16 = vld [vmem:[#allocation4 + $0x80] sm:$0xff]  }
  0x25   :  { %v346_v31 = vsel %vm49_vm0, %v345_v30, 0.0  ;;  %v1188_v42 = vld [vmem:[#allocation4 + $0x78] sm:$0xff]  }
  0x26   :  { %347 = vadd.xlane.f32.xlu0 %v346_v31 }
  0xaa   :  { %v52_v6 = vpop.xlane.xlu0 %51 }
  0xab   :  { %1196 = vrsqrt.f32 %v52_v6  ;;  %vm53_vm3 = vcmp.gt.f32.partialorder %v52_v6, 0.0 }
  0xac   :  { %v644_v32 = vpop.xlane.xlu1 %643 }
  0xad   :  { %1198 = vrsqrt.f32 %v644_v32  ;;  %vm645_vm6 = vcmp.gt.f32.partialorder %v644_v32, 0.0 }
  0xaf   :  { %v348_v50 = vpop.xlane.xlu0 %347 }
  0xb0   :  { %1200 = vrsqrt.f32 %v348_v50  ;;  %vm349_vm7 = vcmp.gt.f32.partialorder %v348_v50, 0.0 }
  0xb8   :  { %v1197_v8 = vpop.eup %1196 }
  0xb9   :  { %v1336_v9 = vsel %vm53_vm3, %v1197_v8, 0.0  ;;  %v1181_v8 = vld [vmem:[#allocation4 + $0xb0] sm:$0xff]  }
  0xba   :  { %v63_v10 = vmul.f32 %v1336_v9, %v47_v7  ;;  %v1199_v39 = vpop.eup %1198 }
  0xbb   :  { %v1381_v45 = vsel %vm645_vm6, %v1199_v39, 0.0 }
  0xbc   :  { %v64_v11 = vpack.c.bf16 %v63_v10, %v63_v10  ;;  %v653_v48 = vmul.f32 %v985_v44, %v1381_v45  ;;  %v1182_v10 = vld [vmem:[#allocation4 + $0xa8] sm:$0xff]  }
  0xbd   :  { %v1201_v55 = vpop.eup %1200 }
  0xbe   :  { %1052 = vmatmul.mubr.msk.bf16.vlgmr.msra.gmra.mxu0 %vm66_vm4, %v64_v11  ;;  %v654_v49 = vpack.c.bf16 %v653_v48, %v653_v48  ;;  %v1400_v60 = vsel %vm349_vm7, %v1201_v55, 0.0  ;;  %v1183_v11 = vld [vmem:[#allocation4 + $0xa0] sm:$0xff]   ;;  %v1190_v55 = vld [vmem:[#allocation4 + $0x68] sm:$0xff]  }
  0xbf   :  { %1077 = vmatprep.mubr.msk.bf16.mxu0 %vm1265_vm2, %v1264_v4  ;;  %1062 = vmatpush3.bf16.msra.mxu0 %v1172_v13  ;;  %v357_v63 = vmul.f32 %v965_v59, %v1400_v60  ;;  %v1184_v13 = vld [vmem:[#allocation4 + $0x98] sm:$0xff]   ;;  %v1194_v59 = vld [vmem:[#allocation4 + $0x48] sm:$0xff]  }
  0xc0   :  { %1063 = vmatprep.subr.bf16.mxu0 %v1264_v4 }
  0xc1   :  { %v358_v7 = vpack.c.bf16 %v357_v63, %v357_v63  ;;  %v972_v63 = vld [vmem:[%s1486_s4 + $0x1] ss:$0 sm:$0xff] }
  0xc3   :  { %1064 = vmatpush3.bf16.msra.mxu0 %v1173_v15  ;;  %v1186_v15 = vld [vmem:[#allocation4 + $0x88] sm:$0xff]  }
  0xc4   :  { %1065 = vmatprep.subr.bf16.mxu0 %v1264_v4 }
  0xc7   :  { %1066 = vmatpush3.bf16.msra.mxu0 %v1174_v17  ;;  %v57_v17 = vlaneseq }
  0xc8   :  { %1067 = vmatprep.subr.bf16.mxu0 %v1264_v4 }
  0xcb   :  { %1068 = vmatpush3.bf16.msra.mxu0 %v1175_v18  ;;  %v1424_v18 = vshrl.u32 %v57_v17, 7 }
  0xcc   :  { %1069 = vmatprep.subr.bf16.mxu0 %v1264_v4 }
  0xcf   :  { %1070 = vmatpush3.bf16.msra.mxu0 %v1176_v19  ;;  %v59_v19 = vstv %s56_s2 }
  0xd0   :  { %1071 = vmatprep.subr.bf16.mxu0 %v1264_v4  ;;  %vm60_vm8 = vcmp.lt.s32.totalorder %v1424_v18, %v59_v19 }
  0xd3   :  { %1072 = vmatpush3.bf16.msra.mxu0 %v1177_v26 }
  0xd4   :  { %1073 = vmatprep.subr.bf16.mxu0 %v1264_v4 }
  0xd7   :  { %1074 = vmatpush3.bf16.msra.mxu0 %v1178_v27 }
  0xd8   :  { %1075 = vmatprep.subr.bf16.mxu0 %v1264_v4 }
  0xdb   :  { %1076 = vmatpush3.bf16.msra.mxu0 %v1179_v28 }
  0xdc   :  { %1125 = vmatprep.subr.bf16.mxu0 %v1264_v4 }
 0x17e   :  { %v108_v20 = vpop.f32.mrf.mxu0 }
 0x17f   :  { %v114_v21 = vpack.c.bf16 %v108_v20, %v108_v20 }
 0x180   :  { %v1053_v22 = vpop.f32.mrf.mxu0 }
 0x181   :  { %v120_v23 = vsel %vm118_vm5, %v114_v21, 0  ;;  %v963_v21 = vld [vmem:[%s1488_s6] ss:$0 sm:$0xff] }
 0x182   :  { %v111_v24 = vpop.f32.mrf.mxu0  ;;  %1056 = vmatpush3.bf16.msra.mxu1 %v120_v23 }
 0x183   :  { %1081 = vmatprep.subr.bf16.mxu1 %v1264_v4 }
 0x184   :  { %v1054_v25 = vpop.f32.mrf.mxu0 }
 0x185   :  { %1058 = vmatmul.mubr.msk.bf16.vlgmr.msra.gmra.mxu1 %vm49_vm0, %v1318_v0  ;;  %v950_v25 = vsel %vm60_vm8, 1.0, %v1264_v4 }
 0x186   :  { %1083 = vmatprep.mubr.msk.bf16.mxu1 %vm1265_vm2, %v1264_v4 }
 0x245   :  { %v156_v33 = vpop.f32.mrf.mxu1 }
 0x246   :  { %v162_v35 = vmul.f32 %v156_v33, %v1336_v9  ;;  %v992_v33 = vld [vmem:[%s1486_s4 + $0x2] ss:$0 sm:$0xff]  ;;  %s966_s4 = sld [smem:[#allocation3 + $0x1]] }
 0x247   :  { %v1059_v36 = vpop.f32.mrf.mxu1 }
 0x248   :  { %v170_v37 = vadd.f32 %v953_v34, %v162_v35 }
 0x249   :  { %v159_v38 = vpop.f32.mrf.mxu1 }
 0x24a   :  { %v171_v40 = vmax.f32 %v170_v37, 0.0 }
 0x24b   :  { %v1060_v41 = vpop.f32.mrf.mxu1 }
 0x24c   :  { %v172_v43 = vmul.f32 %v171_v40, %v1336_v9 }
 0x24e   :  { %v173_v46 = vpack.c.bf16 %v172_v43, %v172_v43 }
 0x250   :  { %1078 = vmatmul.mubr.bf16.vlgmr.msra.gmra.mxu0 %v173_v46 }
 0x251   :  { %1126 = vmatpush3.bf16.msra.mxu0 %v661_v47  ;;  %1127 = vmatprep.mubr.msk.bf16.mxu0 %vm1265_vm2, %v1264_v4 }
 0x252   :  { %1131 = vmatprep.subr.bf16.mxu0 %v1264_v4 }
 0x258   :  { %1128 = vmatmul.mubr.msk.bf16.vlgmr.msra.gmra.mxu0 %vm66_vm4, %v654_v49 }
 0x259   :  { %1133 = vmatprep.mubr.msk.bf16.mxu0 %vm1265_vm2, %v1264_v4 }
 0x310   :  { %v272_v51 = vpop.f32.mrf.mxu0 }
 0x311   :  { %v278_v52 = vpack.c.bf16 %v272_v51, %v272_v51  ;;  %v1189_v51 = vld [vmem:[#allocation4 + $0x70] sm:$0xff]  }
 0x312   :  { %v1079_v53 = vpop.f32.mrf.mxu0 }
 0x313   :  { %v280_v56 = vsel %vm118_vm5, %v278_v52, 0 }
 0x314   :  { %v275_v57 = vpop.f32.mrf.mxu0  ;;  %1082 = vmatpush3.bf16.msra.mxu1 %v280_v56  ;;  %v1191_v56 = vld [vmem:[#allocation4 + $0x60] sm:$0xff]  }
 0x315   :  { %1087 = vmatprep.subr.bf16.mxu1 %v1264_v4  ;;  %v1192_v57 = vld [vmem:[#allocation4 + $0x58] sm:$0xff]  }
 0x316   :  { %v1080_v61 = vpop.f32.mrf.mxu0 }
 0x317   :  { %1084 = vmatmul.mubr.msk.bf16.vlgmr.msra.gmra.mxu1 %vm49_vm0, %v1318_v0  ;;  %v1195_v61 = vld [vmem:[#allocation4 + $0x40] sm:$0xff]  }
 0x318   :  { %v697_v62 = vpop.f32.mrf.mxu0  ;;  %1088 = vmatpush3.bf16.msra.mxu1 %v365_v58  ;;  %1089 = vmatprep.mubr.msk.bf16.mxu1 %vm1265_vm2, %v1264_v4  ;;  %v1193_v58 = vld [vmem:[#allocation4 + $0x50] sm:$0xff]  }
 0x319   :  { %v703_v1 = vpack.c.bf16 %v697_v62, %v697_v62  ;;  %1093 = vmatprep.subr.bf16.mxu1 %v1264_v4 }
 0x31a   :  { %v1129_v2 = vpop.f32.mrf.mxu0 }
 0x31b   :  { %v708_v3 = vsel %vm118_vm5, %v703_v1, 0 }
 0x31c   :  { %1132 = vmatpush3.bf16.msra.mxu0 %v708_v3  ;;  %v700_v6 = vpop.f32.mrf.mxu0 }
 0x31d   :  { %1137 = vmatprep.subr.bf16.mxu0 %v1264_v4 }
 0x31e   :  { %v1130_v0 = vpop.f32.mrf.mxu0 }
 0x31f   :  { %1090 = vmatmul.mubr.msk.bf16.vlgmr.msra.gmra.mxu1 %vm66_vm4, %v358_v7  ;;  %1134 = vmatmul.mubr.msk.bf16.vlgmr.msra.gmra.mxu0 %vm49_vm0, %v1345_v12 }
 0x320   :  { %1138 = vmatpush3.bf16.msra.mxu0 %v1180_v5  ;;  %1095 = vmatprep.mubr.msk.bf16.mxu1 %vm1265_vm2, %v1264_v4 }
 0x321   :  { %1139 = vmatprep.subr.bf16.mxu0 %v1264_v4  ;;  %1153 = vmatprep.mubr.msk.bf16.mxu0 %vm1265_vm2, %v1264_v4 }
 0x324   :  { %1140 = vmatpush3.bf16.msra.mxu0 %v1181_v8 }
 0x325   :  { %1141 = vmatprep.subr.bf16.mxu0 %v1264_v4 }
 0x328   :  { %1142 = vmatpush3.bf16.msra.mxu0 %v1182_v10 }
 0x329   :  { %1143 = vmatprep.subr.bf16.mxu0 %v1264_v4 }
 0x32c   :  { %1144 = vmatpush3.bf16.msra.mxu0 %v1183_v11 }
 0x32d   :  { %1145 = vmatprep.subr.bf16.mxu0 %v1264_v4 }
 0x330   :  { %1146 = vmatpush3.bf16.msra.mxu0 %v1184_v13 }
 0x331   :  { %1147 = vmatprep.subr.bf16.mxu0 %v1264_v4 }
 0x334   :  { %1148 = vmatpush3.bf16.msra.mxu0 %v1185_v14 }
 0x335   :  { %1149 = vmatprep.subr.bf16.mxu0 %v1264_v4 }
 0x338   :  { %1150 = vmatpush3.bf16.msra.mxu0 %v1186_v15 }
 0x339   :  { %1151 = vmatprep.subr.bf16.mxu0 %v1264_v4 }
 0x33c   :  { %1152 = vmatpush3.bf16.msra.mxu0 %v1187_v16 }
 0x3d7   :  { %v316_v20 = vpop.f32.mrf.mxu1 }
 0x3d8   :  { %v322_v22 = vmul.f32 %v316_v20, %v1336_v9 }
 0x3d9   :  { %v1085_v23 = vpop.f32.mrf.mxu1 }
 0x3da   :  { %v330_v24 = vadd.f32 %v963_v21, %v322_v22 }
 0x3db   :  { %v319_v26 = vpop.f32.mrf.mxu1 }
 0x3dc   :  { %v331_v27 = vmax.f32 %v330_v24, 0.0  ;;  %v353_v24 = vstv %s966_s4  ;;  %v983_v26 = vld [vmem:[%s1488_s6 + $0x1] ss:$0 sm:$0xff] }
 0x3dd   :  { %v1086_v28 = vpop.f32.mrf.mxu1  ;;  %vm354_vm9 = vcmp.lt.s32.totalorder %v1424_v18, %v353_v24 }
 0x3de   :  { %v332_v30 = vmul.f32 %v950_v25, %v331_v27 }
 0x3df   :  { %v401_v31 = vpop.f32.mrf.mxu1  ;;  %v744_v32 = vpop.f32.mrf.mxu0 }
 0x3e0   :  { %333 = vst [vmem:[#allocation7] sm:$0xff] %v332_v30  ;;  %v334_v34 = vrot.slane %v332_v30, 4  ;;  %v407_v35 = vpack.c.bf16 %v401_v31, %v401_v31  ;;  %v750_v36 = vmul.f32 %v744_v32, %v1381_v45 }
 0x3e1   :  { %v1091_v9 = vpop.f32.mrf.mxu1  ;;  %v1135_v37 = vpop.f32.mrf.mxu0 }
 0x3e2   :  { %v335_v38 = vmax.f32 %v332_v30, %v334_v34  ;;  %v412_v39 = vsel %vm118_vm5, %v407_v35, 0  ;;  %v759_v40 = vadd.f32 %v992_v33, %v750_v36  ;;  %v967_v30 = vsel %vm354_vm9, 1.0, %v1264_v4  ;;  %v1003_v36 = vld [vmem:[%s1488_s6 + $0x2] ss:$0 sm:$0xff]  ;;  %s1266_s6 = smov [#allocation7]  }
 0x3e3   :  { %v404_v41 = vpop.f32.mrf.mxu1  ;;  %1094 = vmatpush3.bf16.msra.mxu1 %v412_v39  ;;  %v747_v43 = vpop.f32.mrf.mxu0  ;;  %s938_s5 = sshll.u32 %s1266_s6, 4  ;;  %s939_s5 = int_to_ptr.vmem [resolvable:$true] %s938_s5 }
 0x3e4   :  { %v336_v44 = vrot.slane %v335_v38, 2  ;;  %v760_v46 = vmax.f32 %v759_v40, 0.0  ;;  %1099 = vmatprep.subr.bf16.mxu1 %v1264_v4  ;;  %s1234_s16 = scalar_lea.vmem %s939_s5, 768  ;;  %p1239_p11 = scmp.lt.s32.totalorder %s939_s5, %s939_s5 }
 0x3e5   :  { %v1092_v47 = vpop.f32.mrf.mxu1  ;;  %v1136_v48 = vpop.f32.mrf.mxu0  ;;  %p1235_p10 = scmp.ne.s32.totalorder %s939_s5, %s1234_s16  ;;  %p1240_p12 = scmp.lt.s32.totalorder %s1234_s16, %s1234_s16 }
 0x3e6   :  { %v337_v49 = vmax.f32 %v335_v38, %v336_v44  ;;  %v761_v50 = vmul.f32 %v760_v46, %v1381_v45  ;;  %1096 = vmatmul.mubr.msk.bf16.vlgmr.msra.gmra.mxu1 %vm49_vm0, %v1366_v29 }
 0x3e7   :  { %1100 = vmatpush3.bf16.msra.mxu1 %v1188_v42  ;;  %1115 = vmatprep.mubr.msk.bf16.mxu1 %vm1265_vm2, %v1264_v4  ;;  %p1241_p13 = por %p1240_p12, %p1239_p11 }
 0x3e8   :  { %v338_v52 = vrot.slane %v337_v49, 1  ;;  %v762_v53 = vpack.c.bf16 %v761_v50, %v761_v50  ;;  %1101 = vmatprep.subr.bf16.mxu1 %v1264_v4 }
 0x3e9   :  { %p1242_p0 = pnand %p1241_p13, %p1235_p10 }
 0x3ea   :  { %v339_v54 = vmax.f32 %v337_v49, %v338_v52  ;;  %1154 = vmatmul.mubr.bf16.vlgmr.msra.gmra.mxu0 %v762_v53 }
 0x3eb   :  { %1102 = vmatpush3.bf16.msra.mxu1 %v1189_v51 }
 0x3ec   :  { %340 = vst [vmem:[#allocation7 + $0x8] sm:$0xff] %v339_v54  ;;  %1103 = vmatprep.subr.bf16.mxu1 %v1264_v4 }
 0x3ef   :  { %1104 = vmatpush3.bf16.msra.mxu1 %v1190_v55 }
 0x3f0   :  { %1105 = vmatprep.subr.bf16.mxu1 %v1264_v4 }
 0x3f3   :  { %1106 = vmatpush3.bf16.msra.mxu1 %v1191_v56 }
 0x3f4   :  { %1107 = vmatprep.subr.bf16.mxu1 %v1264_v4 }
 0x3f7   :  { %1108 = vmatpush3.bf16.msra.mxu1 %v1192_v57 }
 0x3f8   :  { %1109 = vmatprep.subr.bf16.mxu1 %v1264_v4 }
 0x3fb   :  { %1110 = vmatpush3.bf16.msra.mxu1 %v1193_v58 }
 0x3fc   :  { %1111 = vmatprep.subr.bf16.mxu1 %v1264_v4 }
 0x3ff   :  { %1112 = vmatpush3.bf16.msra.mxu1 %v1194_v59 }
 0x400   :  { %1113 = vmatprep.subr.bf16.mxu1 %v1264_v4 }
 0x403   :  { %1114 = vmatpush3.bf16.msra.mxu1 %v1195_v61 }
 0x404   :  { %1119 = vmatprep.subr.bf16.mxu1 %v1264_v4 }
 0x4a6   :  { %v448_v62 = vpop.f32.mrf.mxu1 }
 0x4a7   :  { %v454_v1 = vmul.f32 %v448_v62, %v1400_v60 }
 0x4a8   :  { %v1097_v2 = vpop.f32.mrf.mxu1 }
 0x4a9   :  { %v463_v3 = vadd.f32 %v972_v63, %v454_v1 }
 0x4aa   :  { %v451_v5 = vpop.f32.mrf.mxu1  ;;  %v862_v6 = vpop.f32.mrf.mxu0 }
 0x4ab   :  { %v464_v7 = vmax.f32 %v463_v3, 0.0  ;;  %v868_v19 = vpack.c.bf16 %v862_v6, %v862_v6 }
 0x4ac   :  { %v1098_v0 = vpop.f32.mrf.mxu1  ;;  %v1155_v8 = vpop.f32.mrf.mxu0 }
 0x4ad   :  { %v465_v10 = vmul.f32 %v464_v7, %v1400_v60  ;;  %v870_v23 = vsel %vm118_vm5, %v868_v19, 0 }
 0x4ae   :  { %v865_v11 = vpop.f32.mrf.mxu0 }
 0x4af   :  { %v466_v13 = vpack.c.bf16 %v465_v10, %v465_v10 }
 0x4b0   :  { %v1156_v14 = vpop.f32.mrf.mxu0 }
 0x4b1   :  { %1116 = vmatmul.mubr.bf16.vlgmr.msra.gmra.mxu1 %v466_v13 }
 0x4b2   :  { %1121 = vmatprep.mubr.msk.bf16.mxu1 %vm1265_vm2, %v1264_v4 }
 0x571   :  { %v566_v15 = vpop.f32.mrf.mxu1 }
 0x572   :  { %v572_v16 = vpack.c.bf16 %v566_v15, %v566_v15 }
 0x573   :  { %v1117_v17 = vpop.f32.mrf.mxu1 }
 0x574   :  { %v574_v20 = vsel %vm118_vm5, %v572_v16, 0 }
 0x575   :  { %v569_v21 = vpop.f32.mrf.mxu1  ;;  %1120 = vmatpush3.bf16.msra.mxu1 %v574_v20 }
 0x576   :  { %1157 = vmatprep.subr.bf16.mxu1 %v1264_v4 }
 0x577   :  { %v1118_v22 = vpop.f32.mrf.mxu1 }
 0x578   :  { %1122 = vmatmul.mubr.msk.bf16.vlgmr.msra.gmra.mxu1 %vm49_vm0, %v1366_v29 }
 0x579   :  { %1158 = vmatpush3.bf16.msra.mxu1 %v870_v23  ;;  %1159 = vmatprep.mubr.msk.bf16.mxu1 %vm1265_vm2, %v1264_v4 }
 0x580   :  { %1160 = vmatmul.mubr.msk.bf16.vlgmr.msra.gmra.mxu1 %vm49_vm0, %v1345_v12  ;;  %v649_v12 = vstv %s986_s11 }
 0x581   :  { %vm650_vm10 = vcmp.lt.s32.totalorder %v1424_v18, %v649_v12 }
 0x582   :  { %v987_v40 = vsel %vm650_vm10, 1.0, %v1264_v4 }
 0x638   :  { %v610_v25 = vpop.f32.mrf.mxu1 }
 0x639   :  { %v616_v27 = vmul.f32 %v610_v25, %v1400_v60 }
 0x63a   :  { %v1123_v29 = vpop.f32.mrf.mxu1 }
 0x63b   :  { %v625_v28 = vadd.f32 %v983_v26, %v616_v27 }
 0x63c   :  { %v613_v31 = vpop.f32.mrf.mxu1 }
 0x63d   :  { %v626_v32 = vmax.f32 %v625_v28, 0.0 }
 0x63e   :  { %v1124_v33 = vpop.f32.mrf.mxu1 }
 0x63f   :  { %v627_v34 = vmul.f32 %v967_v30, %v626_v32 }
 0x640   :  { %v906_v35 = vpop.f32.mrf.mxu1 }
 0x641   :  { %629 = vst [vmem:[#allocation7 + $0x10] sm:$0xff] %v627_v34  ;;  %v630_v9 = vrot.slane %v627_v34, 4  ;;  %v912_v60 = vmul.f32 %v906_v35, %v1381_v45 }
 0x642   :  { %v1161_v37 = vpop.f32.mrf.mxu1 }
 0x643   :  { %v631_v38 = vmax.f32 %v627_v34, %v630_v9  ;;  %v921_v39 = vadd.f32 %v1003_v36, %v912_v60 }
 0x644   :  { %v909_v41 = vpop.f32.mrf.mxu1 }
 0x645   :  { %v632_v42 = vrot.slane %v631_v38, 2  ;;  %v922_v43 = vmax.f32 %v921_v39, 0.0 }
 0x646   :  { %v1162_v44 = vpop.f32.mrf.mxu1 }
 0x647   :  { %v633_v46 = vmax.f32 %v631_v38, %v632_v42  ;;  %v923_v47 = vmul.f32 %v987_v40, %v922_v43 }
 0x649   :  { %v634_v48 = vrot.slane %v633_v46, 1  ;;  %925 = vst [vmem:[#allocation7 + $0x20] sm:$0xff] %v923_v47  ;;  %v926_v49 = vrot.slane %v923_v47, 4 }
 0x64b   :  { %v635_v50 = vmax.f32 %v633_v46, %v634_v48  ;;  %v927_v51 = vmax.f32 %v923_v47, %v926_v49 }
 0x64d   :  { %636 = vst [vmem:[#allocation7 + $0x18] sm:$0xff] %v635_v50  ;;  %v928_v18 = vrot.slane %v927_v51, 2 }
 0x64f   :  { %v929_v52 = vmax.f32 %v927_v51, %v928_v18 }
 0x651   :  { %v930_v45 = vrot.slane %v929_v52, 1 }
 0x653   :  { %v931_v53 = vmax.f32 %v929_v52, %v930_v45 }
 0x655   :  { %932 = vst [vmem:[#allocation7 + $0x28] sm:$0xff] %v931_v53 }
 0x656   :  { %1245 = shalt.err (!%p1242_p0)
}
 0x657   :  { %s1267_s17 = smov 128   ;;  %s1268_s18 = smov 8  }
 0x658   :  { %944 = dma.vmem_to_hbm [thread:$0]  %s939_s5, 768, %s1489_s7, [#allocation6], %s1267_s17, %s1267_s17, %s1268_s18  }
 0x659   :  { %1258 = dma.done.wait [#allocation6], 768  }
 0x65a   :  { %1259 = vsyncadd [#allocation6], 4294966528 }
 0x65b   :  { %948 = vsyncpa [#allocation5], 1 }
 0x65c   :  { %949 = vsyncpa [#allocation6], 1 }

</bundles_post_ra>
